<compile_context>
chip_gen: v7x
topology: tpu7x:2x2x1
jax: 0.10.0
libtpu: 0.0.40
codegen_flags: <defaults>
</compile_context>

<pallas_src>
import jax
import jax.numpy as jnp
from jax.experimental import pallas as pl
from jax.experimental.pallas import tpu as pltpu


def _round_up(v, m):
    return (v + m - 1) // m * m


def _cdiv(a, b):
    return -(-a // b)


# --------------------------------------------------------------------------
# Kernel
# --------------------------------------------------------------------------
def _make_kernel(num_hidden):
    """Fused MLP kernel: num_hidden (Linear -> ReLU) layers + a 1-wide head."""

    def kernel(x_ref, *refs):
        # x_ref : [TB, F0]   batch tile in natural layout (stream dtype)
        # refs  : (W_1, ..., W_H, w_head, out)
        #   W_i    : [F_i, F_{i-1}]  PyTorch [out, in] layout (stream dtype)
        #   w_head : [F_H, 1]        final-layer column (f32)
        #   out    : [1, TB]         lane-dense f32 output tile
        w_refs = refs[:num_hidden]
        whead_ref = refs[num_hidden]
        o_ref = refs[num_hidden + 1]

        # Layer 1: h = relu(W_1 @ x^T).  Contract dim 1 of W_1 with dim 1 of
        # the x block ("NT" matmul) -> [F1, TB] batch-on-lanes, f32 accumulate.
        h = jax.lax.dot_general(
            w_refs[0][...], x_ref[...],
            dimension_numbers=(((1,), (1,)), ((), ())),
            preferred_element_type=jnp.float32)
        h = jnp.maximum(h, 0.0)

        # Remaining hidden layers: standard [out, in] @ [in, TB] matmuls.
        for li in range(1, num_hidden):
            w = w_refs[li][...]
            h = h.astype(w.dtype)      # keep the bf16 MXU path (no-op for f32)
            h = jax.lax.dot_general(
                w, h, dimension_numbers=(((1,), (0,)), ((), ())),
                preferred_element_type=jnp.float32)
            h = jnp.maximum(h, 0.0)

        # Head (out_features == 1): f32 VPU broadcast-multiply + sublane
        # reduction instead of a 1-wide MXU matmul.  Output stays lane-dense.
        o_ref[...] = jnp.sum(h * whead_ref[...], axis=0, keepdims=True)

    return kernel


# --------------------------------------------------------------------------
# Wrapper
# --------------------------------------------------------------------------
def _choose_batch_tile(batch, max_tile):
    """Lane-dense batch tile: multiple of 128, <= max_tile, and (when possible)
    an even number of grid steps so v7x can shard the batch axis over both
    TensorCores.  Per-step overhead dominates this tiny MLP, so bias towards
    the largest tile that keeps padding waste bounded."""
    max_tile = max(128, _round_up(int(max_tile), 128))   # guard: multiple of 128
    if batch <= 128:
        return 128
    steps = _round_up(max(_cdiv(batch, max_tile), 2), 2)  # aim for an even grid
    tile = _round_up(_cdiv(batch, steps), 128)
    tile = min(max(tile, 128), max_tile)
    assert tile % 128 == 0
    return tile


def make_net_forward(weights, *, max_batch_tile=4096, stream_dtype=jnp.bfloat16):
    """Prepare weights once and return a jitted forward(x) -> [B, 1].

    `weights` are PyTorch-layout [out, in] matrices; the default Net gives
    [(50, 10), (50, 50), (1, 50)].  Hidden weights are stored in `stream_dtype`
    (bf16 by default: the v6e/v7x fast path; pass jnp.float32 for exact f32
    parity).  The 1-wide head column stays f32 so the epilogue is pure f32.
    """
    weights = [jnp.asarray(w) for w in weights]
    assert len(weights) >= 2, "Net needs at least one hidden Linear before the head"
    assert weights[-1].shape[0] == 1, "Net's final Linear has out_features == 1"
    for wa, wb in zip(weights[:-1], weights[1:]):
        assert wb.shape[1] == wa.shape[0]

    f0 = int(weights[0].shape[1])
    num_hidden = len(weights) - 1
    hidden_w = tuple(w.astype(stream_dtype) for w in weights[:-1])
    head_col = jnp.asarray(weights[-1], jnp.float32).T          # [F_H, 1]
    kernel = _make_kernel(num_hidden)

    dims = (f0,) + tuple(int(w.shape[0]) for w in weights)
    flops_per_row = 2 * sum(dims[i] * dims[i + 1] for i in range(len(dims) - 1))
    weight_bytes = (sum(int(w.size) * w.dtype.itemsize for w in hidden_w)
                    + int(head_col.size) * 4)

    @jax.jit
    def forward(x):
        batch = int(x.shape[0])
        tb = _choose_batch_tile(batch, max_batch_tile)
        # No transpose/pad pre-pass.  The bf16 cast is a no-op for callers that
        # already hold bf16 activations.
        xs = jnp.asarray(x, stream_dtype)

        in_specs = [pl.BlockSpec((tb, f0), lambda i: (i, 0))]          # x stream
        in_specs += [pl.BlockSpec(tuple(w.shape), lambda i: (0, 0))    # resident
                     for w in hidden_w]
        in_specs += [pl.BlockSpec(tuple(head_col.shape), lambda i: (0, 0))]

        out = pl.pallas_call(
            kernel,
            out_shape=jax.ShapeDtypeStruct((1, batch), jnp.float32),
            grid_spec=pltpu.PrefetchScalarGridSpec(
                num_scalar_prefetch=0,
                grid=(pl.cdiv(batch, tb),),
                in_specs=in_specs,
                out_specs=pl.BlockSpec((1, tb), lambda i: (0, i)),
            ),
            compiler_params=pltpu.CompilerParams(
                dimension_semantics=("parallel",)),
            cost_estimate=pl.CostEstimate(
                flops=flops_per_row * batch,
                transcendentals=0,
                bytes_accessed=int(xs.size) * xs.dtype.itemsize
                               + weight_bytes + batch * 4),
        )(xs, *hidden_w, head_col)

        # [1, B] -> [B, 1] (pure relabel, same data order).
        return out.reshape(batch, 1)

    return forward


# --------------------------------------------------------------------------
# Parameter init + references
# --------------------------------------------------------------------------
def init_params(key, n_features=(10, 50, 50)):
    """Deterministic init matching the PyTorch module's layer shapes
    (nn.Linear default: U(-1/sqrt(fan_in), 1/sqrt(fan_in)), bias=False)."""
    dims = list(n_features) + [1]
    weights = []
    for i in range(len(dims) - 1):
        fan_in, fan_out = dims[i], dims[i + 1]
        key, sub = jax.random.split(key)
        bound = 1.0 / jnp.sqrt(jnp.float32(fan_in))
        w = jax.random.uniform(sub, (fan_out, fan_in), jnp.float32,
                               minval=-bound, maxval=bound)   # PyTorch [out, in]
        weights.append(w)
    return weights


_HI = jax.lax.Precision.HIGHEST


def reference_forward(x, weights):
    """Pure-JAX f32 reference mirroring the PyTorch forward (exact matmuls)."""
    h = jnp.asarray(x, jnp.float32)
    for w in weights[:-1]:
        h = jnp.maximum(jnp.dot(h, jnp.asarray(w, jnp.float32).T, precision=_HI),
                        0.0)
    return jnp.dot(h, jnp.asarray(weights[-1], jnp.float32).T, precision=_HI)


def reference_forward_mixed(x, weights, dt):
    """Reference mirroring the kernel's mixed-precision schedule exactly:
    dt-rounded operands (products exact in f32), f32 accumulation/ReLU/head."""
    f32 = jnp.float32
    h = jnp.asarray(x, f32).astype(dt).astype(f32)
    hidden = weights[:-1]
    for i, w in enumerate(hidden):
        wq = jnp.asarray(w, f32).astype(dt).astype(f32)
        h = jnp.maximum(jnp.dot(h, wq.T, precision=_HI), 0.0)
        if i + 1 < len(hidden):
            h = h.astype(dt).astype(f32)
    return jnp.dot(h, jnp.asarray(weights[-1], f32).T, precision=_HI)


# --------------------------------------------------------------------------
# Demo / self-check
# --------------------------------------------------------------------------
if __name__ == "__main__":
    key = jax.random.PRNGKey(0)
    key, kx1, kx2 = jax.random.split(key, 3)

    weights = init_params(key)                       # [50,10], [50,50], [1,50]

    fwd_bf16 = make_net_forward(weights)                           # fast path
    fwd_f32 = make_net_forward(weights, stream_dtype=jnp.float32)  # exact path

    # --- Small batch: single (ragged) tile, no host-side padding pass. ------
    x1 = jax.random.normal(kx1, (8, 10), jnp.float32)
    ref1 = reference_forward(x1, weights)

    o1 = jax.block_until_ready(fwd_f32(x1))
    assert o1.shape == (8, 1), o1.shape
    # Loose bound only to stay robust to the backend's f32-matmul strategy;
    # the tight algorithmic check is the precision-matched one below.
    assert jnp.allclose(o1, ref1, atol=2e-2, rtol=2e-2)

    o1b = jax.block_until_ready(fwd_bf16(x1))
    assert o1b.shape == (8, 1), o1b.shape
    assert jnp.allclose(o1b, reference_forward_mixed(x1, weights, jnp.bfloat16),
                        atol=2e-3, rtol=2e-3)
    assert jnp.allclose(o1b, ref1, atol=5e-2, rtol=5e-2)

    # --- Larger batch: even multi-step grid (2 x 512) with a ragged tail. ---
    x2 = jax.random.normal(kx2, (1000, 10), jnp.float32)
    ref2 = reference_forward(x2, weights)

    o2 = jax.block_until_ready(fwd_f32(x2))
    assert o2.shape == (1000, 1), o2.shape
    assert jnp.allclose(o2, ref2, atol=2e-2, rtol=2e-2)

    o2b = jax.block_until_ready(fwd_bf16(x2))
    assert o2b.shape == (1000, 1), o2b.shape
    assert jnp.allclose(o2b, reference_forward_mixed(x2, weights, jnp.bfloat16),
                        atol=2e-3, rtol=2e-3)
    assert jnp.allclose(o2b, ref2, atol=5e-2, rtol=5e-2)

    print("KERNEL_OK")
</pallas_src>

<mosaic_0001>
module attributes {stable_mosaic.version = 11 : i64} {
  func.func @kernel(%arg0: i32, %arg1: memref<128x10xf32, #tpu.memory_space<vmem>>, %arg2: memref<50x10xf32, #tpu.memory_space<vmem>>, %arg3: memref<50x50xf32, #tpu.memory_space<vmem>>, %arg4: memref<50x1xf32, #tpu.memory_space<vmem>>, %arg5: memref<1x128xf32, #tpu.memory_space<vmem>>) attributes {dimension_semantics = [#tpu.dimension_semantics<parallel>], iteration_bounds = array<i64: 1>, scalar_prefetch = 0 : i64, scratch_operands = 0 : i64, tpu.core_type = #tpu.core_type<tc>, window_params = [{transform_indices = @transform_0, window_bounds = array<i64: 128, 10>}, {pipeline_mode = #tpu.pipeline_mode<synchronous>, transform_indices = @transform_1, window_bounds = array<i64: 50, 10>}, {pipeline_mode = #tpu.pipeline_mode<synchronous>, transform_indices = @transform_2, window_bounds = array<i64: 50, 50>}, {pipeline_mode = #tpu.pipeline_mode<synchronous>, transform_indices = @transform_3, window_bounds = array<i64: 50, 1>}, {transform_indices = @transform_4, window_bounds = array<i64: 1, 128>}]} {
    %c0 = arith.constant 0 : index
    %c0_0 = arith.constant 0 : index
    %0 = vector.load %arg2[%c0, %c0_0] : memref<50x10xf32, #tpu.memory_space<vmem>>, vector<50x10xf32>
    %c0_1 = arith.constant 0 : index
    %c0_2 = arith.constant 0 : index
    %1 = vector.load %arg1[%c0_1, %c0_2] : memref<128x10xf32, #tpu.memory_space<vmem>>, vector<128x10xf32>
    %cst = arith.constant dense<0.000000e+00> : vector<50x128xf32>
    %2 = tpu.matmul %0, %1, %cst {dimension_numbers = #tpu.dot_dimension_numbers<[1], [1], [0], [0], [0, 0, 1, 0], [], []>} : vector<50x10xf32>, vector<128x10xf32>, vector<50x128xf32> -> vector<50x128xf32>
    %cst_3 = arith.constant 0.000000e+00 : f32
    %3 = vector.broadcast %cst_3 : f32 to vector<50x128xf32>
    %4 = arith.maximumf %2, %3 : vector<50x128xf32>
    %c0_4 = arith.constant 0 : index
    %c0_5 = arith.constant 0 : index
    %5 = vector.load %arg3[%c0_4, %c0_5] : memref<50x50xf32, #tpu.memory_space<vmem>>, vector<50x50xf32>
    %cst_6 = arith.constant dense<0.000000e+00> : vector<50x128xf32>
    %6 = tpu.matmul %5, %4, %cst_6 {dimension_numbers = #tpu.dot_dimension_numbers<[1], [0], [0], [1], [0, 0, 1, 1], [], []>} : vector<50x50xf32>, vector<50x128xf32>, vector<50x128xf32> -> vector<50x128xf32>
    %cst_7 = arith.constant 0.000000e+00 : f32
    %7 = vector.broadcast %cst_7 : f32 to vector<50x128xf32>
    %8 = arith.maximumf %6, %7 : vector<50x128xf32>
    %c0_8 = arith.constant 0 : index
    %c0_9 = arith.constant 0 : index
    %9 = vector.load %arg4[%c0_8, %c0_9] : memref<50x1xf32, #tpu.memory_space<vmem>>, vector<50x1xf32>
    %10 = vector.broadcast %9 : vector<50x1xf32> to vector<50x128xf32>
    %11 = arith.mulf %8, %10 : vector<50x128xf32>
    %cst_10 = arith.constant dense<0.000000e+00> : vector<128xf32>
    %12 = vector.multi_reduction <add>, %11, %cst_10 [0] : vector<50x128xf32> to vector<128xf32>
    %13 = vector.shape_cast %12 : vector<128xf32> to vector<1x128xf32>
    %c0_11 = arith.constant 0 : index
    %c0_12 = arith.constant 0 : index
    %14 = vector.load %arg5[%c0_11, %c0_12] : memref<1x128xf32, #tpu.memory_space<vmem>>, vector<1x128xf32>
    tpu.vector_store %arg5[%c0_11, %c0_12], %13 {strides = array<i32>} : memref<1x128xf32, #tpu.memory_space<vmem>>, vector<1x128xf32>,
    return
  }
  func.func @transform_0(%arg0: i32) -> (i32, i32) {
    %c0_i32 = arith.constant 0 : i32
    %c0_i32_0 = arith.constant 0 : i32
    return %arg0, %c0_i32 : i32, i32
  }
  func.func @transform_1(%arg0: i32) -> (i32, i32) {
    %c0_i32 = arith.constant 0 : i32
    %c0_i32_0 = arith.constant 0 : i32
    %c0_i32_1 = arith.constant 0 : i32
    return %c0_i32, %c0_i32_0 : i32, i32
  }
  func.func @transform_2(%arg0: i32) -> (i32, i32) {
    %c0_i32 = arith.constant 0 : i32
    %c0_i32_0 = arith.constant 0 : i32
    %c0_i32_1 = arith.constant 0 : i32
    return %c0_i32, %c0_i32_0 : i32, i32
  }
  func.func @transform_3(%arg0: i32) -> (i32, i32) {
    %c0_i32 = arith.constant 0 : i32
    %c0_i32_0 = arith.constant 0 : i32
    %c0_i32_1 = arith.constant 0 : i32
    return %c0_i32, %c0_i32_0 : i32, i32
  }
  func.func @transform_4(%arg0: i32) -> (i32, i32) {
    %c0_i32 = arith.constant 0 : i32
    %c0_i32_0 = arith.constant 0 : i32
    return %c0_i32, %arg0 : i32, i32
  }
}

</mosaic_0001>

<bundles_post_ra>
// kernel: forward.1
= control target key start
LH: loop header
LB: loop body
LE: loop exit
PB: predicated region body
PF: predicated region fallthrough
CT: control target
= control target key end

     0   :  { %9 = vsyncpa [#allocation3], 0  ;;  %s1022_s0 = inlined_call_operand.hbm [shape: f32[8,10], index: 0, kind: input, shape index: {}]   ;;  %s1023_s1 = inlined_call_operand.hbm [shape: f32[50,10], index: 1, kind: input, shape index: {}]   ;;  %s1024_s2 = inlined_call_operand.hbm [shape: f32[50,50], index: 2, kind: input, shape index: {}]   ;;  %s1025_s3 = inlined_call_operand.hbm [shape: f32[50,1], index: 3, kind: input, shape index: {}]   ;;  %s1026_s4 = inlined_call_operand.hbm [shape: f32[1,8], index: 4, kind: output, shape index: {}]  }
   0x1   :  { %10 = vsyncpa [#allocation6], 0 }
   0x2   :  { %11 = vsyncpa [#allocation9], 0 }
   0x3   :  { %12 = vsyncpa [#allocation4], 0 }
   0x4   :  { %17 = vsyncadd [#allocation3], 1920  ;;  %s821_s15 = smov [#allocation5]   ;;  %s822_s17 = smov [#allocation2]  }
   0x5   :  { %s30_s16 = sshll.u32 %s821_s15, 4  ;;  %s18_s18 = sshll.u32 %s822_s17, 4  ;;  %s31_s16 = int_to_ptr.vmem [resolvable:$true] %s30_s16  ;;  %s857_s18 = int_to_ptr.vmem [resolvable:$true] %s18_s18 }
   0x6   :  { %s703_s21 = scalar_lea.hbm %s1023_s1, 896 }
   0x7   :  { %p704_p0 = scmp.ne.s32.totalorder %s1023_s1, %s703_s21  ;;  %p707_p1 = scmp.lt.u32.totalorder %s703_s21, %s1023_s1 }
   0x9   :  { %p709_p2 = pnand %p707_p1, %p704_p0 }
   0xb   :  { %712 = shalt.err (!%p709_p2)
}
   0xc   :  { %s713_s26 = scalar_lea.vmem %s31_s16, 896  ;;  %p718_p4 = scmp.lt.s32.totalorder %s31_s16, %s31_s16 }
   0xd   :  { %p714_p3 = scmp.ne.s32.totalorder %s31_s16, %s713_s26  ;;  %p719_p5 = scmp.lt.s32.totalorder %s713_s26, %s713_s26 }
   0xf   :  { %p720_p6 = por %p719_p5, %p718_p4 }
  0x11   :  { %p721_p7 = pnand %p720_p6, %p714_p3 }
  0x13   :  { %724 = shalt.err (!%p721_p7)
}
  0x14   :  { %s823_s27 = smov 128   ;;  %s824_s28 = smov 8  }
  0x15   :  { %36 = dma.hbm_to_vmem [thread:$0]  %s1023_s1, 896, %s31_s16, [#allocation6], %s823_s27, %s823_s27, %s824_s28  }
  0x16   :  { %s725_s7 = scalar_lea.hbm %s1022_s0, 128 }
  0x17   :  { %p726_p8 = scmp.ne.s32.totalorder %s1022_s0, %s725_s7  ;;  %p729_p9 = scmp.lt.u32.totalorder %s725_s7, %s1022_s0 }
  0x19   :  { %p731_p10 = pnand %p729_p9, %p726_p8 }
  0x1b   :  { %734 = shalt.err (!%p731_p10)
}
  0x1c   :  { %s735_s12 = scalar_lea.vmem %s857_s18, 128  ;;  %s739_s1 = scalar_lea.vmem %s857_s18, 2048 }
  0x1d   :  { %p736_p11 = scmp.ne.s32.totalorder %s857_s18, %s735_s12  ;;  %p740_p12 = scmp.lt.s32.totalorder %s857_s18, %s857_s18 }
  0x1e   :  { %p741_p13 = scmp.lt.s32.totalorder %s739_s1, %s735_s12 }
  0x20   :  { %p742_p0 = por %p741_p13, %p740_p12 }
  0x22   :  { %p743_p1 = pnand %p742_p0, %p736_p11 }
  0x24   :  { %746 = shalt.err (!%p743_p1)
}
  0x25   :  { %24 = dma.hbm_to_vmem [thread:$0]  %s1022_s0, 128, %s857_s18, [#allocation3], %s823_s27, %s823_s27, %s824_s28  }
  0x26   :  { %s825_s15 = smov [#allocation7]   ;;  %s826_s17 = smov [#allocation8]  }
  0x27   :  { %s42_s16 = sshll.u32 %s825_s15, 4  ;;  %s54_s19 = sshll.u32 %s826_s17, 4  ;;  %s43_s16 = int_to_ptr.vmem [resolvable:$true] %s42_s16  ;;  %s895_s19 = int_to_ptr.vmem [resolvable:$true] %s54_s19 }
  0x28   :  { %s747_s22 = scalar_lea.hbm %s1024_s2, 896 }
  0x29   :  { %p748_p2 = scmp.ne.s32.totalorder %s1024_s2, %s747_s22  ;;  %p751_p3 = scmp.lt.u32.totalorder %s747_s22, %s1024_s2 }
  0x2b   :  { %p753_p4 = pnand %p751_p3, %p748_p2 }
  0x2d   :  { %756 = shalt.err (!%p753_p4)
}
  0x2e   :  { %s757_s0 = scalar_lea.vmem %s43_s16, 896  ;;  %p762_p6 = scmp.lt.s32.totalorder %s43_s16, %s43_s16 }
  0x2f   :  { %p758_p5 = scmp.ne.s32.totalorder %s43_s16, %s757_s0  ;;  %p763_p7 = scmp.lt.s32.totalorder %s757_s0, %s757_s0 }
  0x31   :  { %p764_p8 = por %p763_p7, %p762_p6 }
  0x33   :  { %p765_p9 = pnand %p764_p8, %p758_p5 }
  0x35   :  { %768 = shalt.err (!%p765_p9)
}
  0x36   :  { %48 = dma.hbm_to_vmem [thread:$0]  %s1024_s2, 896, %s43_s16, [#allocation6], %s823_s27, %s823_s27, %s824_s28  }
  0x37   :  { %s769_s6 = scalar_lea.hbm %s1025_s3, 896 }
  0x38   :  { %p770_p10 = scmp.ne.s32.totalorder %s1025_s3, %s769_s6  ;;  %p773_p11 = scmp.lt.u32.totalorder %s769_s6, %s1025_s3 }
  0x3a   :  { %p775_p12 = pnand %p773_p11, %p770_p10 }
  0x3c   :  { %778 = shalt.err (!%p775_p12)
}
  0x3d   :  { %s779_s11 = scalar_lea.vmem %s895_s19, 896  ;;  %p784_p0 = scmp.lt.s32.totalorder %s895_s19, %s895_s19 }
  0x3e   :  { %p780_p13 = scmp.ne.s32.totalorder %s895_s19, %s779_s11  ;;  %p785_p1 = scmp.lt.s32.totalorder %s779_s11, %s779_s11 }
  0x40   :  { %p786_p2 = por %p785_p1, %p784_p0 }
  0x42   :  { %p787_p3 = pnand %p786_p2, %p780_p13 }
  0x44   :  { %790 = shalt.err (!%p787_p3)
}
  0x45   :  { %60 = dma.hbm_to_vmem [thread:$0]  %s1025_s3, 896, %s895_s19, [#allocation9], %s823_s27, %s823_s27, %s824_s28  }
  0x46   :  { %813 = dma.done.wait [#allocation3], 2048  }
  0x47   :  { %814 = vsyncadd [#allocation3], 4294965248 }
  0x48   :  { %815 = dma.done.wait [#allocation6], 1792  }
  0x49   :  { %816 = vsyncadd [#allocation6], 4294965504 }
  0x4a   :  { %817 = dma.done.wait [#allocation9], 896  }
  0x4b   :  { %818 = vsyncadd [#allocation9], 4294966400  ;;  %v827_v0 = vmov 0.0|0.0   ;;  %vm828_vm0 = vmmov 0   ;;  %v829_v1 = vmov 0.0   ;;  %vm96_vm1 = vcmask 80896  }
  0x4c   :  { %649 = vmatprep.subr.bf16.mxu0 %v827_v0  ;;  %593 = vmatprep.mubr.msk.f32.mxu0 %vm828_vm0, %v829_v1  ;;  %v80_v2 = vld [vmem:[#allocation2] sm:$0xff]  ;;  %v81_v3 = vld [vmem:[#allocation2 + $0x8] sm:$0xff]  ;;  %vm940_vm2 = vmpackc.low %vm96_vm1, %vm96_vm1  ;;  %v830_v36 = vmov 0   ;;  %vm302_vm3 = vcmask 1041408   ;;  %vm280_vm4 = vcmask 408576   ;;  %s831_s3 = smov [#allocation10]  }
  0x4d   :  { %681 = vmatprep.subr.bf16.mxu1 %v827_v0  ;;  %628 = vmatprep.mubr.msk.f32.mxu1 %vm828_vm0, %v829_v1  ;;  %v650_v5 = vpack.c.bf16 %v81_v3, %v80_v2  ;;  %v82_v6 = vld [vmem:[#allocation2 + $0x10] sm:$0xff]  ;;  %v83_v7 = vld [vmem:[#allocation2 + $0x18] sm:$0xff]  ;;  %v84_v9 = vld [vmem:[#allocation2 + $0x20] sm:$0xff]  ;;  %s482_s27 = sshll.u32 %s831_s3, 4  ;;  %s483_s27 = int_to_ptr.vmem [resolvable:$true] %s482_s27 }
  0x4e   :  { %v654_v8 = vpack.c.bf16 %v83_v7, %v82_v6  ;;  %v85_v10 = vld [vmem:[#allocation2 + $0x28] sm:$0xff]  ;;  %v86_v12 = vld [vmem:[#allocation2 + $0x30] sm:$0xff]  ;;  %v87_v13 = vld [vmem:[#allocation2 + $0x38] sm:$0xff]  ;;  %701 = vset.pattern.permute.xlu0 %v830_v36  ;;  %702 = vset.pattern.permute.xlu1 %v830_v36  ;;  %s791_s28 = scalar_lea.vmem %s483_s27, 16  ;;  %s795_s1 = scalar_lea.vmem %s483_s27, 32 }
  0x4f   :  { %652 = vmatpush3.bf16.xpose.msk.msra.mxu0 %vm940_vm2, %v650_v5  ;;  %v658_v11 = vpack.c.bf16 %v85_v10, %v84_v9  ;;  %v662_v14 = vpack.c.bf16 %v87_v13, %v86_v12  ;;  %v88_v15 = vld [vmem:[#allocation2 + $0x40] sm:$0xff]  ;;  %v89_v16 = vld [vmem:[#allocation2 + $0x48] sm:$0xff]  ;;  %v90_v18 = vld [vmem:[#allocation2 + $0x50] sm:$0xff]  ;;  %p792_p4 = scmp.ne.s32.totalorder %s483_s27, %s791_s28  ;;  %p796_p5 = scmp.lt.s32.totalorder %s483_s27, %s483_s27 }
  0x50   :  { %653 = vmatprep.subr.bf16.mxu0 %v827_v0  ;;  %v666_v17 = vpack.c.bf16 %v89_v16, %v88_v15  ;;  %v91_v19 = vld [vmem:[#allocation2 + $0x58] sm:$0xff]  ;;  %v92_v21 = vld [vmem:[#allocation2 + $0x60] sm:$0xff]  ;;  %v93_v22 = vld [vmem:[#allocation2 + $0x68] sm:$0xff]  ;;  %p797_p6 = scmp.lt.s32.totalorder %s795_s1, %s791_s28 }
  0x51   :  { %v670_v20 = vpack.c.bf16 %v91_v19, %v90_v18  ;;  %v674_v23 = vpack.c.bf16 %v93_v22, %v92_v21  ;;  %v94_v24 = vld [vmem:[#allocation2 + $0x70] sm:$0xff]  ;;  %v95_v25 = vld [vmem:[#allocation2 + $0x78] sm:$0xff]  ;;  %v73_v27 = vld [vmem:[#allocation5] sm:$0xff] }
  0x52   :  { %v678_v26 = vpack.c.bf16 %v95_v25, %v94_v24  ;;  %v74_v28 = vld [vmem:[#allocation5 + $0x8] sm:$0xff]  ;;  %v75_v29 = vld [vmem:[#allocation5 + $0x10] sm:$0xff]  ;;  %v76_v30 = vld [vmem:[#allocation5 + $0x18] sm:$0xff]  ;;  %p798_p7 = por %p797_p6, %p796_p5 }
  0x53   :  { %v77_v31 = vld [vmem:[#allocation5 + $0x20] sm:$0xff]  ;;  %v78_v32 = vld [vmem:[#allocation5 + $0x28] sm:$0xff]  ;;  %v79_v33 = vld [vmem:[#allocation5 + $0x30] sm:$0x3] }
  0x54   :  { %v413_v34 = vld [vmem:[#allocation8] sm:$0xff]  ;;  %v415_v35 = vld [vmem:[#allocation8 + $0x10] sm:$0xff]  ;;  %v414_v37 = vld [vmem:[#allocation8 + $0x8] sm:$0xff]  ;;  %p799_p8 = pnand %p798_p7, %p792_p4 }
  0x55   :  { %422 = vperm.xlu0 %701, %v413_v34   ;;  %432 = vperm.xlu1 %702, %v415_v35   ;;  %v416_v38 = vld [vmem:[#allocation8 + $0x18] sm:$0xff]  ;;  %v417_v39 = vld [vmem:[#allocation8 + $0x20] sm:$0xff]  ;;  %v418_v40 = vld [vmem:[#allocation8 + $0x28] sm:$0xff] }
  0x56   :  { %v419_v41 = vld [vmem:[#allocation8 + $0x30] sm:$0x3]  ;;  %v273_v4 = vld [vmem:[#allocation7] sm:$0xff]  ;;  %v275_v5 = vld [vmem:[#allocation7 + $0x10] sm:$0xff] }
  0x57   :  { %656 = vmatpush3.bf16.xpose.msk.msra.mxu0 %vm940_vm2, %v654_v8  ;;  %v276_v6 = vld [vmem:[#allocation7 + $0x18] sm:$0xff]  ;;  %v277_v7 = vld [vmem:[#allocation7 + $0x20] sm:$0xff]  ;;  %v278_v8 = vld [vmem:[#allocation7 + $0x28] sm:$0xff] }
  0x58   :  { %657 = vmatprep.subr.bf16.mxu0 %v827_v0  ;;  %v279_v9 = vld [vmem:[#allocation7 + $0x30] sm:$0x3] }
  0x59   :  { %427 = vperm.xlu0 %701, %v414_v37   ;;  %437 = vperm.xlu1 %702, %v416_v38  }
  0x5d   :  { %442 = vperm.xlu0 %701, %v417_v39   ;;  %447 = vperm.xlu1 %702, %v418_v40  }
  0x5f   :  { %660 = vmatpush3.bf16.xpose.msk.msra.mxu0 %vm940_vm2, %v658_v11 }
  0x60   :  { %661 = vmatprep.subr.bf16.mxu0 %v827_v0 }
  0x61   :  { %452 = vperm.xlu0 %701, %v419_v41  }
  0x67   :  { %664 = vmatpush3.bf16.xpose.msk.msra.mxu0 %vm940_vm2, %v662_v14 }
  0x68   :  { %665 = vmatprep.subr.bf16.mxu0 %v827_v0 }
  0x6f   :  { %668 = vmatpush3.bf16.xpose.msk.msra.mxu0 %vm940_vm2, %v666_v17 }
  0x70   :  { %669 = vmatprep.subr.bf16.mxu0 %v827_v0 }
  0x77   :  { %672 = vmatpush3.bf16.xpose.msk.msra.mxu0 %vm940_vm2, %v670_v20 }
  0x78   :  { %673 = vmatprep.subr.bf16.mxu0 %v827_v0 }
  0x7f   :  { %676 = vmatpush3.bf16.xpose.msk.msra.mxu0 %vm940_vm2, %v674_v23 }
  0x80   :  { %677 = vmatprep.subr.bf16.mxu0 %v827_v0 }
  0x87   :  { %680 = vmatpush3.bf16.xpose.msk.msra.mxu0 %vm940_vm2, %v678_v26 }
  0x8e   :  { %594 = vmatmul.mubr.msk.f32.vlgmr.msra.gmra.mrb[0].mxu0 %vm96_vm1, %v73_v27 }
  0x8f   :  { %596 = vmatprep.mubr.msk.f32.mxu0 %vm828_vm0, %v829_v1 }
  0x92   :  { %597 = vmatmul.mubr.msk.f32.gmra.mrb[2].mxu0 %vm96_vm1, %v74_v28 }
  0x93   :  { %599 = vmatprep.mubr.msk.f32.mxu0 %vm828_vm0, %v829_v1 }
  0x96   :  { %600 = vmatmul.mubr.msk.f32.gmra.mrb[4].mxu0 %vm96_vm1, %v75_v29 }
  0x97   :  { %602 = vmatprep.mubr.msk.f32.mxu0 %vm828_vm0, %v829_v1 }
  0x9a   :  { %603 = vmatmul.mubr.msk.f32.gmra.mrb[6].mxu0 %vm96_vm1, %v76_v30 }
  0x9b   :  { %605 = vmatprep.mubr.msk.f32.mxu0 %vm828_vm0, %v829_v1 }
  0x9e   :  { %606 = vmatmul.mubr.msk.f32.gmra.mrb[8].mxu0 %vm96_vm1, %v77_v31 }
  0x9f   :  { %608 = vmatprep.mubr.msk.f32.mxu0 %vm828_vm0, %v829_v1 }
  0xa2   :  { %609 = vmatmul.mubr.msk.f32.gmra.mrb[10].mxu0 %vm96_vm1, %v78_v32 }
  0xa3   :  { %611 = vmatprep.mubr.msk.f32.mxu0 %vm828_vm0, %v829_v1 }
  0xa6   :  { %612 = vmatmul.mubr.msk.f32.gmra.mrb[12].mxu0 %vm96_vm1, %v79_v33 }
  0xd4   :  { %v423_v10 = vpop.permute.xlu0 %422  ;;  %v433_v18 = vpop.permute.xlu1 %432 }
  0xd8   :  { %v428_v15 = vpop.permute.xlu0 %427  ;;  %v438_v26 = vpop.permute.xlu1 %437 }
  0xdc   :  { %v443_v35 = vpop.permute.xlu0 %442  ;;  %v448_v41 = vpop.permute.xlu1 %447 }
 0x161   :  { %v232_v42 = vpop.f32.mrb[0].mxu0 }
 0x162   :  { %v595_v43 = vpop.f32.mrb[1].mxu0  ;;  %v266_v45 = vmax.f32 %v232_v42, 0.0 }
 0x165   :  { %v237_v44 = vpop.f32.mrb[2].mxu0 }
 0x166   :  { %v267_v46 = vmax.f32 %v237_v44, 0.0  ;;  %v598_v47 = vpop.f32.mrb[3].mxu0 }
 0x167   :  { %v453_v47 = vpop.permute.xlu0 %452 }
 0x168   :  { %v682_v48 = vpack.c.bf16 %v267_v46, %v266_v45 }
 0x169   :  { %v242_v49 = vpop.f32.mrb[4].mxu0 }
 0x16a   :  { %v601_v50 = vpop.f32.mrb[5].mxu0  ;;  %683 = vmatpush3.bf16.msra.mxu1 %v682_v48  ;;  %v268_v52 = vmax.f32 %v242_v49, 0.0 }
 0x16b   :  { %684 = vmatprep.subr.bf16.mxu1 %v827_v0 }
 0x16d   :  { %v247_v51 = vpop.f32.mrb[6].mxu0 }
 0x16e   :  { %v269_v53 = vmax.f32 %v247_v51, 0.0  ;;  %v604_v54 = vpop.f32.mrb[7].mxu0 }
 0x170   :  { %v685_v55 = vpack.c.bf16 %v269_v53, %v268_v52 }
 0x171   :  { %v252_v56 = vpop.f32.mrb[8].mxu0 }
 0x172   :  { %v607_v57 = vpop.f32.mrb[9].mxu0  ;;  %686 = vmatpush3.bf16.msra.mxu1 %v685_v55  ;;  %v270_v59 = vmax.f32 %v252_v56, 0.0 }
 0x173   :  { %687 = vmatprep.subr.bf16.mxu1 %v827_v0  ;;  %v274_v0 = vld [vmem:[#allocation7 + $0x8] sm:$0xff] }
 0x175   :  { %v257_v58 = vpop.f32.mrb[10].mxu0 }
 0x176   :  { %v271_v60 = vmax.f32 %v257_v58, 0.0  ;;  %v610_v61 = vpop.f32.mrb[11].mxu0 }
 0x178   :  { %v688_v62 = vpack.c.bf16 %v271_v60, %v270_v59 }
 0x179   :  { %v262_v63 = vpop.f32.mrb[12].mxu0 }
 0x17a   :  { %v272_v2 = vmax.f32 %v262_v63, 0.0  ;;  %689 = vmatpush3.bf16.msra.mxu1 %v688_v62  ;;  %v613_v3 = vpop.f32.mrb[13].mxu0 }
 0x17b   :  { %626 = vmatprep.subr.mxu1 %v829_v1 }
 0x17e   :  { %627 = vmatpush3.msk.msra.mxu1 %vm302_vm3, %v272_v2 }
 0x17f   :  { %629 = vmatmul.mubr.msk.f32.vlgmr.msra.gmra.mrb[0].mxu1 %vm280_vm4, %v273_v4 }
 0x180   :  { %631 = vmatprep.mubr.msk.f32.mxu1 %vm828_vm0, %v829_v1 }
 0x183   :  { %632 = vmatmul.mubr.msk.f32.gmra.mrb[2].mxu1 %vm280_vm4, %v274_v0 }
 0x184   :  { %634 = vmatprep.mubr.msk.f32.mxu1 %vm828_vm0, %v829_v1 }
 0x187   :  { %635 = vmatmul.mubr.msk.f32.gmra.mrb[4].mxu1 %vm280_vm4, %v275_v5 }
 0x188   :  { %637 = vmatprep.mubr.msk.f32.mxu1 %vm828_vm0, %v829_v1 }
 0x18b   :  { %638 = vmatmul.mubr.msk.f32.gmra.mrb[6].mxu1 %vm280_vm4, %v276_v6 }
 0x18c   :  { %640 = vmatprep.mubr.msk.f32.mxu1 %vm828_vm0, %v829_v1 }
 0x18f   :  { %641 = vmatmul.mubr.msk.f32.gmra.mrb[8].mxu1 %vm280_vm4, %v277_v7 }
 0x190   :  { %643 = vmatprep.mubr.msk.f32.mxu1 %vm828_vm0, %v829_v1 }
 0x193   :  { %644 = vmatmul.mubr.msk.f32.gmra.mrb[10].mxu1 %vm280_vm4, %v278_v8 }
 0x194   :  { %646 = vmatprep.mubr.msk.f32.mxu1 %vm828_vm0, %v829_v1 }
 0x197   :  { %647 = vmatmul.mubr.msk.f32.gmra.mrb[12].mxu1 %vm280_vm4, %v279_v9 }
 0x252   :  { %v372_v11 = vpop.f32.mrb[0].mxu1 }
 0x253   :  { %v630_v12 = vpop.f32.mrb[1].mxu1  ;;  %v406_v13 = vmax.f32 %v372_v11, 0.0 }
 0x255   :  { %v455_v19 = vmul.f32 %v423_v10, %v406_v13 }
 0x256   :  { %v377_v14 = vpop.f32.mrb[2].mxu1 }
 0x257   :  { %v407_v16 = vmax.f32 %v377_v14, 0.0  ;;  %v633_v17 = vpop.f32.mrb[3].mxu1 }
 0x259   :  { %v456_v20 = vmul.f32 %v428_v15, %v407_v16 }
 0x25a   :  { %v382_v21 = vpop.f32.mrb[4].mxu1 }
 0x25b   :  { %v462_v22 = vadd.f32 %v456_v20, %v455_v19  ;;  %v408_v23 = vmax.f32 %v382_v21, 0.0  ;;  %v636_v24 = vpop.f32.mrb[5].mxu1 }
 0x25d   :  { %v457_v25 = vmul.f32 %v433_v18, %v408_v23 }
 0x25e   :  { %v387_v1 = vpop.f32.mrb[6].mxu1 }
 0x25f   :  { %v463_v27 = vadd.f32 %v462_v22, %v457_v25  ;;  %v409_v28 = vmax.f32 %v387_v1, 0.0  ;;  %v639_v29 = vpop.f32.mrb[7].mxu1 }
 0x261   :  { %v458_v30 = vmul.f32 %v438_v26, %v409_v28 }
 0x262   :  { %v392_v31 = vpop.f32.mrb[8].mxu1 }
 0x263   :  { %v464_v32 = vadd.f32 %v463_v27, %v458_v30  ;;  %v410_v33 = vmax.f32 %v392_v31, 0.0  ;;  %v642_v34 = vpop.f32.mrb[9].mxu1 }
 0x265   :  { %v459_v36 = vmul.f32 %v443_v35, %v410_v33 }
 0x266   :  { %v397_v37 = vpop.f32.mrb[10].mxu1 }
 0x267   :  { %v465_v38 = vadd.f32 %v464_v32, %v459_v36  ;;  %v411_v39 = vmax.f32 %v397_v37, 0.0  ;;  %v645_v40 = vpop.f32.mrb[11].mxu1 }
 0x269   :  { %v460_v42 = vmul.f32 %v448_v41, %v411_v39 }
 0x26a   :  { %v402_v43 = vpop.f32.mrb[12].mxu1 }
 0x26b   :  { %v466_v44 = vadd.f32 %v465_v38, %v460_v42  ;;  %v412_v45 = vmax.f32 %v402_v43, 0.0  ;;  %v648_v46 = vpop.f32.mrb[13].mxu1 }
 0x26d   :  { %v461_v48 = vmul.f32 %v453_v47, %v412_v45 }
 0x26f   :  { %v467_v49 = vsel %vm302_vm3, %v461_v48, 0.0 }
 0x270   :  { %v468_v50 = vadd.f32 %v467_v49, %v466_v44 }
 0x272   :  { %v469_v51 = vrot.slane %v468_v50, 4 }
 0x274   :  { %v470_v52 = vadd.f32 %v469_v51, %v468_v50 }
 0x276   :  { %v471_v53 = vrot.slane %v470_v52, 2 }
 0x278   :  { %v472_v54 = vadd.f32 %v471_v53, %v470_v52 }
 0x27a   :  { %v473_v55 = vrot.slane %v472_v54, 1 }
 0x27c   :  { %v474_v56 = vadd.f32 %v473_v55, %v472_v54 }
 0x27e   :  { %475 = vst [vmem:[#allocation10] sm:$0x1] %v474_v56 }
 0x27f   :  { %802 = shalt.err (!%p799_p8)
}
 0x280   :  { %s803_s15 = scalar_lea.hbm %s1026_s4, 16 }
 0x281   :  { %p804_p9 = scmp.ne.s32.totalorder %s1026_s4, %s803_s15  ;;  %p807_p10 = scmp.lt.u32.totalorder %s803_s15, %s1026_s4 }
 0x283   :  { %p809_p11 = pnand %p807_p10, %p804_p9 }
 0x285   :  { %812 = shalt.err (!%p809_p11)
}
 0x286   :  { %485 = dma.vmem_to_hbm [thread:$0]  %s483_s27, 16, %s1026_s4, [#allocation4]  }
 0x287   :  { %819 = dma.done.wait [#allocation4], 16  }
 0x288   :  { %820 = vsyncadd [#allocation4], 4294967280 }
 0x289   :  { %489 = vsyncpa [#allocation3], 1 }
 0x28a   :  { %490 = vsyncpa [#allocation6], 1 }
 0x28b   :  { %491 = vsyncpa [#allocation9], 1 }
 0x28c   :  { %492 = vsyncpa [#allocation4], 1 }

</bundles_post_ra>
